<compile_context>
chip_gen: v7x
topology: tpu7x:2x2x1
jax: 0.10.0
libtpu: 0.0.40
codegen_flags: <defaults>
</compile_context>

<pallas_src>
import functools

import jax
import jax.numpy as jnp
from jax.experimental import pallas as pl
from jax.experimental.pallas import tpu as pltpu

_LANE = 128
_TARGET_X_TILE_BYTES = 8 << 20        # ~8 MiB of x per grid step (review item 1)


def _cdiv(a, b):
    return -(-a // b)


def _round_up(x, m):
    return (x + m - 1) // m * m


def _round_down(x, m):
    return x // m * m


def _vmem_capacity_bytes():
    try:
        info = pltpu.get_tpu_info()
        cap = getattr(info, "vmem_capacity_bytes", None)
        if cap:
            return int(cap)
    except Exception:
        pass
    return 64 << 20                    # conservative fallback: v7x per-TC VMEM


def _choose_tiles(B, F, itemsize, tile_b, tile_f):
    """Pick (tile_b, tile_f, vmem_limit_bytes) for the kernel."""
    vmem_cap = _vmem_capacity_bytes()
    # Total on-chip budget: <= half of physical VMEM and <= 48 MiB
    # (v5e/v6e: 48 MiB of 128 MiB; v7x: 32 MiB of 64 MiB per TensorCore).
    budget_total = min(vmem_cap // 2, 48 << 20)
    x_budget_bytes = max(budget_total - (4 << 20), 8 << 20)   # for the 2x x tile
    x_budget_elems = x_budget_bytes // (2 * itemsize)          # per x tile
    target_elems = _TARGET_X_TILE_BYTES // itemsize

    # --- feature tile: full F unless even a 128-row block busts the budget ----
    if tile_f is None:
        if _LANE * F <= x_budget_elems:
            tile_f = F
        else:
            tile_f = max(_LANE, _round_down(x_budget_elems // _LANE, _LANE))
            tile_f = min(tile_f, F)
    else:
        if tile_f >= F or F <= _LANE:
            tile_f = F
        else:
            tile_f = max(_LANE, _round_down(tile_f, _LANE))

    # --- batch tile: target-sized, VMEM-capped, >=2 tiles when B is large -----
    if tile_b is None:
        rows_budget = max(_LANE, _round_down(x_budget_elems // tile_f, _LANE))
        rows_target = max(_LANE, _round_down(target_elems // tile_f, _LANE))
        rows_cap = min(rows_budget, rows_target)
        if B >= 2 * _LANE:
            # keep >= 2 batch tiles so the "parallel" axis feeds both v7x TCs
            tile_b = min(rows_cap, _round_up(_cdiv(B, 2), _LANE))
        else:
            tile_b = min(rows_cap, B)          # single full-batch block
    else:
        if tile_b >= B:
            tile_b = B
        else:
            tile_b = max(_LANE, _round_down(tile_b, _LANE))
            tile_b = B if tile_b >= B else tile_b

    # VMEM limit: double-buffered x/w/out tiles + f32 accumulator + slack.
    needed = (2 * tile_b * tile_f + 2 * tile_f + 2 * tile_b + tile_b) * itemsize
    vmem_limit = max(needed + (2 << 20), 16 << 20)
    vmem_limit = min(vmem_limit, max(vmem_cap - (8 << 20), 16 << 20))
    return tile_b, tile_f, int(vmem_limit)


def _review_classifier_kernel(x_ref, w_ref, b_ref, o_ref, acc_ref, *,
                              apply_sigmoid, mask_f, f_total, tile_f):
    # x_ref:   (tile_b, tile_f) VMEM  batch x feature tile
    # w_ref:   (1, tile_f)      VMEM  weight chunk (resident when tile_f == F)
    # b_ref:   (1, 1)           SMEM  scalar bias
    # o_ref:   (1, tile_b)      VMEM  lane-dense output row for this batch tile
    # acc_ref: (tile_b, 1)      VMEM  f32 partial-sum accumulator over F chunks
    j = pl.program_id(1)

    @pl.when(j == 0)
    def _init():
        acc_ref[...] = jnp.zeros_like(acc_ref)

    # fc1 as VPU multiply + cross-lane reduce (f32 accumulate); avoids the
    # degenerate N=1 MXU GEMV and any in-kernel weight transpose.
    prod = x_ref[...].astype(jnp.float32) * w_ref[...].astype(jnp.float32)
    if mask_f:
        # Partial trailing F chunk: zero out-of-range columns (stale VMEM data).
        col = jax.lax.broadcasted_iota(jnp.int32, prod.shape, 1) + j * tile_f
        prod = jnp.where(col < f_total, prod, 0.0)
    acc_ref[...] += jnp.sum(prod, axis=-1, keepdims=True)        # (tile_b, 1)

    @pl.when(j == pl.num_programs(1) - 1)
    def _finalize():
        # Relayout first, then bias/sigmoid on the lane-dense row: tile_b/128
        # dense vregs of VALU/EUP work instead of tile_b/8 one-lane vregs.
        row = jnp.transpose(acc_ref[...])                        # (1, tile_b)
        row = row + b_ref[0, 0]
        if apply_sigmoid:
            row = jax.nn.sigmoid(row)
        o_ref[...] = row.astype(o_ref.dtype)


def review_classifier_forward(x_in, weight, bias, apply_sigmoid=False,
                              tile_b=None, tile_f=None):
    """Pallas forward pass of ReviewClassifier.

    x_in:   (batch, num_features) float32
    weight: (1, num_features)     float32   (PyTorch Linear weight layout)
    bias:   (1,)                  float32
    returns (batch,) float32  (squeezed, like the PyTorch module)
    """
    B, F = x_in.shape
    assert weight.shape == (1, F)
    assert bias.shape == (1,)
    weight = weight.astype(x_in.dtype)
    bias = bias.astype(x_in.dtype)

    itemsize = jnp.dtype(x_in.dtype).itemsize
    tile_b, tile_f, vmem_limit = _choose_tiles(B, F, itemsize, tile_b, tile_f)
    num_b_tiles = _cdiv(B, tile_b)
    num_f_tiles = _cdiv(F, tile_f)

    kernel = functools.partial(
        _review_classifier_kernel,
        apply_sigmoid=apply_sigmoid,
        mask_f=(F % tile_f) != 0,
        f_total=F,
        tile_f=tile_f)

    out = pl.pallas_call(
        kernel,
        out_shape=jax.ShapeDtypeStruct((1, B), x_in.dtype),
        grid=(num_b_tiles, num_f_tiles),          # reduction (F) axis last
        in_specs=[
            # batch x feature tile of x (partial trailing blocks allowed)
            pl.BlockSpec((tile_b, tile_f), lambda i, j: (i, j)),
            # weight chunk; constant block index when tile_f == F -> resident
            pl.BlockSpec((1, tile_f), lambda i, j: (0, j)),
            # scalar bias in SMEM
            pl.BlockSpec((1, 1), lambda i, j: (0, 0),
                         memory_space=pltpu.MemorySpace.SMEM),
        ],
        # lane-dense (1, tile_b) output row per batch tile (constant across j)
        out_specs=pl.BlockSpec((1, tile_b), lambda i, j: (0, i)),
        scratch_shapes=[pltpu.VMEM((tile_b, 1), jnp.float32)],
        compiler_params=pltpu.CompilerParams(
            dimension_semantics=("parallel", "arbitrary"),
            vmem_limit_bytes=vmem_limit),
    )(x_in, weight, bias.reshape(1, 1))

    # .squeeze(): (1, B) -> (batch,)
    return out.reshape(B)


if __name__ == "__main__":
    key = jax.random.PRNGKey(0)
    k1, k2, k3, k4, k5, k6, k7, k8 = jax.random.split(key, 8)

    def ref_forward(x, w, b, sig=False):
        y = jnp.sum(x * w, axis=-1) + b[0]
        return jax.nn.sigmoid(y) if sig else y

    # 1) small single-tile batch: logits + sigmoid --------------------------------
    B1, F1 = 8, 256
    x1 = jax.random.normal(k1, (B1, F1), dtype=jnp.float32)
    w1 = jax.random.normal(k2, (1, F1), dtype=jnp.float32) * 0.05
    b1 = jax.random.normal(k3, (1,), dtype=jnp.float32) * 0.05
    y1 = review_classifier_forward(x1, w1, b1, apply_sigmoid=False)
    p1 = review_classifier_forward(x1, w1, b1, apply_sigmoid=True)
    jax.block_until_ready((y1, p1))
    assert y1.shape == (B1,) and p1.shape == (B1,)
    assert jnp.allclose(y1, ref_forward(x1, w1, b1), atol=1e-5, rtol=1e-5)
    assert jnp.allclose(p1, ref_forward(x1, w1, b1, True), atol=1e-5, rtol=1e-5)

    # 2) multi batch-tile path (auto tile_b -> 2 tiles, trailing partial block) ---
    B2, F2 = 384, 384
    x2 = jax.random.normal(k4, (B2, F2), dtype=jnp.float32)
    w2 = jax.random.normal(k5, (1, F2), dtype=jnp.float32) * 0.05
    b2 = jax.random.normal(k6, (1,), dtype=jnp.float32) * 0.05
    y2 = review_classifier_forward(x2, w2, b2)
    jax.block_until_ready(y2)
    assert y2.shape == (B2,)
    assert jnp.allclose(y2, ref_forward(x2, w2, b2), atol=1e-4, rtol=1e-4)

    # 3) feature-tiled path with a masked partial F chunk -------------------------
    B3, F3 = 16, 320
    x3 = jax.random.normal(k7, (B3, F3), dtype=jnp.float32)
    w3 = jax.random.normal(k8, (1, F3), dtype=jnp.float32) * 0.05
    y3 = review_classifier_forward(x3, w3, b1, apply_sigmoid=True, tile_f=128)
    jax.block_until_ready(y3)
    assert y3.shape == (B3,)
    assert jnp.allclose(y3, ref_forward(x3, w3, b1, True), atol=1e-4, rtol=1e-4)

    print("KERNEL_OK")
</pallas_src>

<mosaic_0001>
module attributes {stable_mosaic.version = 11 : i64} {
  func.func @_review_classifier_kernel(%arg0: i32, %arg1: i32, %arg2: memref<8x256xf32, #tpu.memory_space<vmem>>, %arg3: memref<1x256xf32, #tpu.memory_space<vmem>>, %arg4: memref<1x1xf32, #tpu.memory_space<smem>>, %arg5: memref<1x8xf32, #tpu.memory_space<vmem>>, %arg6: memref<8x1xf32, #tpu.memory_space<vmem>>) attributes {dimension_semantics = [#tpu.dimension_semantics<parallel>, #tpu.dimension_semantics<arbitrary>], iteration_bounds = array<i64: 1, 1>, scalar_prefetch = 0 : i64, scratch_operands = 1 : i64, tpu.core_type = #tpu.core_type<tc>, window_params = [{transform_indices = @transform_0, window_bounds = array<i64: 8, 256>}, {transform_indices = @transform_1, window_bounds = array<i64: 1, 256>}, {transform_indices = @transform_2, window_bounds = array<i64: 1, 1>}, {transform_indices = @transform_3, window_bounds = array<i64: 1, 8>}]} {
    %c0_i32 = arith.constant 0 : i32
    %0 = arith.cmpi eq, %arg1, %c0_i32 : i32
    %1 = arith.extui %0 : i1 to i32
    %c0_i32_0 = arith.constant 0 : i32
    %2 = arith.cmpi ne, %1, %c0_i32_0 : i32
    scf.if %2 {
      %cst_10 = arith.constant 0.000000e+00 : f32
      %15 = vector.broadcast %cst_10 : f32 to vector<8x1xf32>
      %c0_11 = arith.constant 0 : index
      %c0_12 = arith.constant 0 : index
      %16 = vector.load %arg6[%c0_11, %c0_12] : memref<8x1xf32, #tpu.memory_space<vmem>>, vector<8x1xf32>
      tpu.vector_store %arg6[%c0_11, %c0_12], %15 {strides = array<i32>} : memref<8x1xf32, #tpu.memory_space<vmem>>, vector<8x1xf32>,
    } else {
    }
    %c0 = arith.constant 0 : index
    %c0_1 = arith.constant 0 : index
    %3 = vector.load %arg2[%c0, %c0_1] : memref<8x256xf32, #tpu.memory_space<vmem>>, vector<8x256xf32>
    %c0_2 = arith.constant 0 : index
    %c0_3 = arith.constant 0 : index
    %4 = vector.load %arg3[%c0_2, %c0_3] : memref<1x256xf32, #tpu.memory_space<vmem>>, vector<1x256xf32>
    %5 = vector.broadcast %4 : vector<1x256xf32> to vector<8x256xf32>
    %6 = arith.mulf %3, %5 : vector<8x256xf32>
    %c0_4 = arith.constant 0 : index
    %c0_5 = arith.constant 0 : index
    %7 = vector.load %arg6[%c0_4, %c0_5] : memref<8x1xf32, #tpu.memory_space<vmem>>, vector<8x1xf32>
    %cst = arith.constant dense<0.000000e+00> : vector<8xf32>
    %8 = vector.multi_reduction <add>, %6, %cst [1] : vector<8x256xf32> to vector<8xf32>
    %9 = vector.shape_cast %8 : vector<8xf32> to vector<8x1xf32>
    %10 = arith.addf %7, %9 : vector<8x1xf32>
    %c0_6 = arith.constant 0 : index
    %c0_7 = arith.constant 0 : index
    %11 = vector.load %arg6[%c0_6, %c0_7] : memref<8x1xf32, #tpu.memory_space<vmem>>, vector<8x1xf32>
    tpu.vector_store %arg6[%c0_6, %c0_7], %10 {strides = array<i32>} : memref<8x1xf32, #tpu.memory_space<vmem>>, vector<8x1xf32>,
    %c0_i32_8 = arith.constant 0 : i32
    %12 = arith.cmpi eq, %arg1, %c0_i32_8 : i32
    %13 = arith.extui %12 : i1 to i32
    %c0_i32_9 = arith.constant 0 : i32
    %14 = arith.cmpi ne, %13, %c0_i32_9 : i32
    scf.if %14 {
      %c0_10 = arith.constant 0 : index
      %c0_11 = arith.constant 0 : index
      %15 = vector.load %arg6[%c0_10, %c0_11] : memref<8x1xf32, #tpu.memory_space<vmem>>, vector<8x1xf32>
      %16 = tpu.transpose %15, [1, 0] : vector<8x1xf32> -> vector<1x8xf32>
      %c0_12 = arith.constant 0 : index
      %c0_13 = arith.constant 0 : index
      %17 = memref.load %arg4[%c0_12, %c0_13] : memref<1x1xf32, #tpu.memory_space<smem>>
      %18 = vector.broadcast %17 : f32 to vector<1x8xf32>
      %19 = arith.addf %16, %18 : vector<1x8xf32>
      %c0_14 = arith.constant 0 : index
      %c0_15 = arith.constant 0 : index
      %20 = vector.load %arg5[%c0_14, %c0_15] : memref<1x8xf32, #tpu.memory_space<vmem>>, vector<1x8xf32>
      tpu.vector_store %arg5[%c0_14, %c0_15], %19 {strides = array<i32>} : memref<1x8xf32, #tpu.memory_space<vmem>>, vector<1x8xf32>,
    } else {
    }
    return
  }
  func.func @transform_0(%arg0: i32, %arg1: i32) -> (i32, i32) {
    %c0_i32 = arith.constant 0 : i32
    return %arg0, %arg1 : i32, i32
  }
  func.func @transform_1(%arg0: i32, %arg1: i32) -> (i32, i32) {
    %c0_i32 = arith.constant 0 : i32
    %c0_i32_0 = arith.constant 0 : i32
    return %c0_i32, %arg1 : i32, i32
  }
  func.func @transform_2(%arg0: i32, %arg1: i32) -> (i32, i32) {
    %c0_i32 = arith.constant 0 : i32
    %c0_i32_0 = arith.constant 0 : i32
    %c0_i32_1 = arith.constant 0 : i32
    return %c0_i32, %c0_i32_0 : i32, i32
  }
  func.func @transform_3(%arg0: i32, %arg1: i32) -> (i32, i32) {
    %c0_i32 = arith.constant 0 : i32
    %c0_i32_0 = arith.constant 0 : i32
    return %c0_i32, %arg0 : i32, i32
  }
}

</mosaic_0001>

<bundles_post_ra>
// kernel: tpu_custom_call.1
= control target key start
LH: loop header
LB: loop body
LE: loop exit
PB: predicated region body
PF: predicated region fallthrough
CT: control target
= control target key end

     0   :  { %9 = vsyncpa [#allocation5], 0  ;;  %s219_s0 = inlined_call_operand.hbm [shape: f32[8,256], index: 0, kind: input, shape index: {}]   ;;  %s220_s1 = inlined_call_operand.vmem [shape: f32[1,256], index: 1, kind: input, shape index: {}]   ;;  %s221_s2 = inlined_call_operand.<no memory space> [shape: f32[1,1], index: 2, kind: input, shape index: {}]   ;;  %s222_s3 = inlined_call_operand.hbm [shape: f32[1,8], index: 3, kind: output, shape index: {}]  }
   0x1   :  { %10 = vsyncpa [#allocation6], 0  ;;  %s164_s12 = smov [#allocation4]   ;;  %s116_s16 = scalar_lea.hbm %s219_s0, 256 }
   0x2   :  { %s17_s13 = sshll.u32 %s164_s12, 4  ;;  %p117_p0 = scmp.ne.s32.totalorder %s219_s0, %s116_s16  ;;  %s18_s13 = int_to_ptr.vmem [resolvable:$true] %s17_s13 }
   0x3   :  { %p120_p1 = scmp.lt.u32.totalorder %s116_s16, %s219_s0 }
   0x5   :  { %p122_p2 = pnand %p120_p1, %p117_p0 }
   0x7   :  { %125 = shalt.err (!%p122_p2)
}
   0x8   :  { %s126_s21 = scalar_lea.vmem %s18_s13, 256  ;;  %p131_p4 = scmp.lt.s32.totalorder %s18_s13, %s18_s13 }
   0x9   :  { %p127_p3 = scmp.ne.s32.totalorder %s18_s13, %s126_s21  ;;  %p132_p5 = scmp.lt.s32.totalorder %s126_s21, %s126_s21 }
   0xb   :  { %p133_p6 = por %p132_p5, %p131_p4 }
   0xd   :  { %p134_p7 = pnand %p133_p6, %p127_p3 }
   0xf   :  { %137 = shalt.err (!%p134_p7)
}
  0x10   :  { %20 = dma.hbm_to_vmem [thread:$0]  %s219_s0, 256, %s18_s13, [#allocation5]  }
  0x11   :  { %160 = dma.done.wait [#allocation5], 256  }
  0x12   :  { %161 = vsyncadd [#allocation5], 4294967040  ;;  %v38_v0 = vlaneseq  ;;  %vm32_vm0 = vcmask 7168   ;;  %v165_v1 = vmov 0.0   ;;  %v34_v5 = vld [vmem:[#allocation4] sm:$0xff]  ;;  %v35_v6 = vld [vmem:[#allocation4 + $0x8] sm:$0xff]  ;;  %v94_v17 = vstv %s221_s2 }
  0x13   :  { %33 = vst.msk [vmem:[#allocation2] sm:$0xff] %vm32_vm0, %v165_v1  ;;  %v36_v7 = vld [vmem:[%s220_s1] sm:$0x3]  ;;  %s166_s27 = smov [#allocation7]   ;;  %vm96_vm1 = vcmask 57344  }
  0x14   :  { %v39_v2 = vshrl.u32 %v38_v0, 7  ;;  %s104_s28 = sshll.u32 %s166_s27, 4  ;;  %s105_s28 = int_to_ptr.vmem [resolvable:$true] %s104_s28 }
  0x15   :  { %s138_s1 = scalar_lea.vmem %s105_s28, 16  ;;  %s142_s29 = scalar_lea.vmem %s105_s28, 32 }
  0x16   :  { %v40_v3 = vsub.s32 0, %v39_v2  ;;  %v44_v4 = vsub.s32 1, %v39_v2  ;;  %p139_p8 = scmp.ne.s32.totalorder %s105_s28, %s138_s1  ;;  %p143_p9 = scmp.lt.s32.totalorder %s105_s28, %s105_s28 }
  0x17   :  { %p144_p10 = scmp.lt.s32.totalorder %s142_s29, %s138_s1 }
  0x18   :  { %v41_v8 = vrot.slane %v36_v7, %v40_v3  ;;  %v45_v9 = vrot.slane %v36_v7, %v44_v4 }
  0x19   :  { %p145_p11 = por %p144_p10, %p143_p9 }
  0x1a   :  { %v48_v10 = vmul.f32 %v41_v8, %v34_v5  ;;  %v49_v11 = vmul.f32 %v45_v9, %v35_v6  ;;  %v50_v13 = vld [vmem:[#allocation2] sm:$0xff] }
  0x1b   :  { %p146_p12 = pnand %p145_p11, %p139_p8 }
  0x1c   :  { %v51_v12 = vadd.f32 %v49_v11, %v48_v10 }
  0x1e   :  { %52 = vadd.xlane.f32.xlu0 %v51_v12 }
  0xab   :  { %v53_v14 = vpop.xlane.xlu0 %52 }
  0xac   :  { %v54_v15 = vadd.f32 %v53_v14, %v50_v13 }
  0xae   :  { %56 = vst.msk [vmem:[#allocation2] sm:$0xff] %vm32_vm0, %v54_v15 }
  0xb5   :  { %v60_v16 = vld [vmem:[#allocation2] sm:$0xff] }
  0xb6   :  { %61 = vxpose.xlu0.b32.start.end [1/1] (short) (narrow) %v60_v16, 8 }
 0x136   :  { %v77_v18 = vpop.trf.xlu0 }
 0x137   :  { %v95_v19 = vadd.f32 %v94_v17, %v77_v18 }
 0x139   :  { %97 = vst.msk [vmem:[#allocation7] sm:$0x1] %vm96_vm1, %v95_v19 }
 0x13a   :  { %149 = shalt.err (!%p146_p12)
}
 0x13b   :  { %s150_s5 = scalar_lea.hbm %s222_s3, 16 }
 0x13c   :  { %p151_p13 = scmp.ne.s32.totalorder %s222_s3, %s150_s5  ;;  %p154_p0 = scmp.lt.u32.totalorder %s150_s5, %s222_s3 }
 0x13e   :  { %p156_p1 = pnand %p154_p0, %p151_p13 }
 0x140   :  { %159 = shalt.err (!%p156_p1)
}
 0x141   :  { %107 = dma.vmem_to_hbm [thread:$0]  %s105_s28, 16, %s222_s3, [#allocation6]  }
 0x142   :  { %162 = dma.done.wait [#allocation6], 16  }
 0x143   :  { %163 = vsyncadd [#allocation6], 4294967280 }
 0x144   :  { %111 = vsyncpa [#allocation5], 1 }
 0x145   :  { %112 = vsyncpa [#allocation6], 1 }

</bundles_post_ra>
